<compile_context>
chip_gen: v6e
topology: v6e:2x2x1
jax: 0.10.0
libtpu: 0.0.40
codegen_flags: <defaults>
</compile_context>

<pallas_src>
import functools

import jax
import jax.numpy as jnp
from jax import lax
from jax.experimental import pallas as pl
from jax.experimental.pallas import tpu as pltpu


def qfunc_kernel(obs_ref, act_ref, w1o_ref, w1a_ref, b1_ref,
                 w2_ref, b2_ref, w3t_ref, b3_ref, o_ref, *, matmul_dtype):
    def mm(a, b):
        # Weights already arrive in matmul_dtype (cast once in the wrapper);
        # astype on a same-dtype operand is a no-op, so only activations cast here.
        return jnp.dot(a.astype(matmul_dtype), b.astype(matmul_dtype),
                       preferred_element_type=jnp.float32)

    # Layer 1 (fused concat): concat([obs, act]) @ w1 == obs @ w1[:od] + act @ w1[od:]
    h = mm(obs_ref[...], w1o_ref[...]) + mm(act_ref[...], w1a_ref[...]) + b1_ref[...]
    h = jnp.maximum(h, 0.0)                                    # f32 bias/ReLU on VPU

    # Layer 2: Linear + ReLU -> (TM, H2) f32
    h = jnp.maximum(mm(h, w2_ref[...]) + b2_ref[...], 0.0)

    # Layer 3 in [out, in] form, contracting the hidden dim of both operands:
    # (1, H2) . (TM, H2) -> (1, TM)  => lane-dense result, batch on the lane axis,
    # no materialized transpose of h.
    q = lax.dot_general(
        w3t_ref[...].astype(matmul_dtype), h.astype(matmul_dtype),
        dimension_numbers=(((1,), (1,)), ((), ())),
        preferred_element_type=jnp.float32) + b3_ref[...]
    o_ref[...] = q.astype(o_ref.dtype)


def mlp_q_function(obs, act, params, *, tm=None, matmul_dtype=jnp.float32):
    """obs: [B, obs_dim], act: [B, act_dim] -> q: [B]"""
    w1, b1, w2, b2, w3, b3 = params
    B, obs_dim = obs.shape
    _, act_dim = act.shape
    h1 = w1.shape[1]
    h2 = w2.shape[1]

    # One-time tiny weight re-layouts / casts (outside the kernel; negligible).
    w1o = w1[:obs_dim].astype(matmul_dtype)   # split first-layer weight (no concat of x)
    w1a = w1[obs_dim:].astype(matmul_dtype)
    w2c = w2.astype(matmul_dtype)
    w3t = w3.T.astype(matmul_dtype)           # (1, h2): torch-native [out, in] form

    # Batch tile: single block for small B, otherwise lane-aligned multi-block grid.
    if tm is None:
        tm = B if B <= 1024 else 1024
    if tm != B:
        assert tm % 128 == 0, "batch tile must be a multiple of 128 (lane-dense store)"
        pad = (-B) % tm
        if pad:  # zero-pad ragged batches so every block is full; sliced off below
            obs = jnp.pad(obs, ((0, pad), (0, 0)))
            act = jnp.pad(act, ((0, pad), (0, 0)))
    else:
        pad = 0
    Bp = B + pad
    grid = (Bp // tm,)

    resident = lambda i: (0, 0)               # weights/biases stay resident in VMEM
    kernel = functools.partial(qfunc_kernel, matmul_dtype=matmul_dtype)

    in_dim = obs_dim + act_dim
    cost = pl.CostEstimate(
        flops=2 * Bp * (in_dim * h1 + h1 * h2 + h2),
        transcendentals=0,
        bytes_accessed=int(4 * (Bp * in_dim + Bp
                                + in_dim * h1 + h1 * h2 + h2 + h1 + h2 + 1)),
    )

    q2d = pl.pallas_call(
        kernel,
        out_shape=jax.ShapeDtypeStruct((1, Bp), jnp.float32),
        grid=grid,
        in_specs=[
            pl.BlockSpec((tm, obs_dim), lambda i: (i, 0)),   # obs tile (pipelined)
            pl.BlockSpec((tm, act_dim), lambda i: (i, 0)),   # act tile (pipelined)
            pl.BlockSpec((obs_dim, h1), resident),           # w1[:obs_dim]
            pl.BlockSpec((act_dim, h1), resident),           # w1[obs_dim:]
            pl.BlockSpec((1, h1), resident),                 # b1 (f32)
            pl.BlockSpec((h1, h2), resident),                # w2
            pl.BlockSpec((1, h2), resident),                 # b2 (f32)
            pl.BlockSpec((1, h2), resident),                 # w3.T  ([out, in])
            pl.BlockSpec((1, 1), resident),                  # b3 (f32)
        ],
        out_specs=pl.BlockSpec((1, tm), lambda i: (0, i)),   # lane-dense output row
        compiler_params=pltpu.CompilerParams(
            dimension_semantics=("parallel",),               # megacore on v7x
        ),
        cost_estimate=cost,
    )(obs, act, w1o, w1a, b1, w2c, b2, w3t, b3)

    return q2d[0, :B]   # (B,)  == torch.squeeze(q, -1)


def init_params(key, obs_dim, act_dim, hidden_sizes):
    """Deterministic init mimicking torch.nn.Linear (uniform +-1/sqrt(fan_in)).
    Weights stored as [in, out] (transpose of torch), biases as [1, out]."""
    sizes = [obs_dim + act_dim] + list(hidden_sizes) + [1]
    params = []
    for j in range(len(sizes) - 1):
        fan_in, fan_out = sizes[j], sizes[j + 1]
        key, kw, kb = jax.random.split(key, 3)
        bound = 1.0 / (fan_in ** 0.5)
        w = jax.random.uniform(kw, (fan_in, fan_out), jnp.float32, -bound, bound)
        b = jax.random.uniform(kb, (1, fan_out), jnp.float32, -bound, bound)
        params += [w, b]
    return tuple(params)


def reference_q(obs, act, params):
    w1, b1, w2, b2, w3, b3 = params
    x = jnp.concatenate([obs, act], axis=-1)
    h = jnp.maximum(x @ w1 + b1, 0.0)
    h = jnp.maximum(h @ w2 + b2, 0.0)
    q = h @ w3 + b3
    return jnp.squeeze(q, -1)


if __name__ == "__main__":
    obs_dim, act_dim = 12, 4
    hidden_sizes = (32, 32)
    batch = 256     # small, but enough to exercise the batch grid (2 steps of 128)
    tm = 128

    key = jax.random.PRNGKey(0)
    k_obs, k_act, k_params = jax.random.split(key, 3)
    obs = jax.random.normal(k_obs, (batch, obs_dim), jnp.float32)
    act = jax.random.normal(k_act, (batch, act_dim), jnp.float32)
    params = init_params(k_params, obs_dim, act_dim, hidden_sizes)

    # f32 matmul path (exact parity with the reference)
    q = mlp_q_function(obs, act, params, tm=tm)
    jax.block_until_ready(q)
    q_ref = reference_q(obs, act, params)
    assert q.shape == (batch,)
    assert jnp.allclose(q, q_ref, atol=1e-5, rtol=1e-5)

    # bf16 matmul operands (v6e/v7x MXU path), f32 accumulation / bias / ReLU
    q_bf16 = mlp_q_function(obs, act, params, tm=tm, matmul_dtype=jnp.bfloat16)
    jax.block_until_ready(q_bf16)
    assert jnp.allclose(q_bf16, q_ref, atol=5e-2, rtol=5e-2)

    print("KERNEL_OK")
</pallas_src>

<mosaic_0001>
module attributes {stable_mosaic.version = 11 : i64} {
  func.func @qfunc_kernel(%arg0: i32, %arg1: memref<128x12xf32, #tpu.memory_space<vmem>>, %arg2: memref<128x4xf32, #tpu.memory_space<vmem>>, %arg3: memref<12x32xf32, #tpu.memory_space<vmem>>, %arg4: memref<4x32xf32, #tpu.memory_space<vmem>>, %arg5: memref<1x32xf32, #tpu.memory_space<vmem>>, %arg6: memref<32x32xf32, #tpu.memory_space<vmem>>, %arg7: memref<1x32xf32, #tpu.memory_space<vmem>>, %arg8: memref<1x32xf32, #tpu.memory_space<vmem>>, %arg9: memref<1x1xf32, #tpu.memory_space<vmem>>, %arg10: memref<1x128xf32, #tpu.memory_space<vmem>>) attributes {dimension_semantics = [#tpu.dimension_semantics<parallel>], iteration_bounds = array<i64: 2>, scalar_prefetch = 0 : i64, scratch_operands = 0 : i64, tpu.core_type = #tpu.core_type<tc>, window_params = [{transform_indices = @transform_0, window_bounds = array<i64: 128, 12>}, {transform_indices = @transform_1, window_bounds = array<i64: 128, 4>}, {pipeline_mode = #tpu.pipeline_mode<synchronous>, transform_indices = @transform_2, window_bounds = array<i64: 12, 32>}, {pipeline_mode = #tpu.pipeline_mode<synchronous>, transform_indices = @transform_3, window_bounds = array<i64: 4, 32>}, {pipeline_mode = #tpu.pipeline_mode<synchronous>, transform_indices = @transform_4, window_bounds = array<i64: 1, 32>}, {pipeline_mode = #tpu.pipeline_mode<synchronous>, transform_indices = @transform_5, window_bounds = array<i64: 32, 32>}, {pipeline_mode = #tpu.pipeline_mode<synchronous>, transform_indices = @transform_6, window_bounds = array<i64: 1, 32>}, {pipeline_mode = #tpu.pipeline_mode<synchronous>, transform_indices = @transform_7, window_bounds = array<i64: 1, 32>}, {pipeline_mode = #tpu.pipeline_mode<synchronous>, transform_indices = @transform_8, window_bounds = array<i64: 1, 1>}, {transform_indices = @transform_9, window_bounds = array<i64: 1, 128>}]} {
    %c0 = arith.constant 0 : index
    %c0_0 = arith.constant 0 : index
    %0 = vector.load %arg1[%c0, %c0_0] : memref<128x12xf32, #tpu.memory_space<vmem>>, vector<128x12xf32>
    %c0_1 = arith.constant 0 : index
    %c0_2 = arith.constant 0 : index
    %1 = vector.load %arg3[%c0_1, %c0_2] : memref<12x32xf32, #tpu.memory_space<vmem>>, vector<12x32xf32>
    %cst = arith.constant dense<0.000000e+00> : vector<128x32xf32>
    %2 = tpu.matmul %0, %1, %cst {dimension_numbers = #tpu.dot_dimension_numbers<[1], [0], [0], [1], [0, 0, 1, 1], [], []>} : vector<128x12xf32>, vector<12x32xf32>, vector<128x32xf32> -> vector<128x32xf32>
    %c0_3 = arith.constant 0 : index
    %c0_4 = arith.constant 0 : index
    %3 = vector.load %arg2[%c0_3, %c0_4] : memref<128x4xf32, #tpu.memory_space<vmem>>, vector<128x4xf32>
    %c0_5 = arith.constant 0 : index
    %c0_6 = arith.constant 0 : index
    %4 = vector.load %arg4[%c0_5, %c0_6] : memref<4x32xf32, #tpu.memory_space<vmem>>, vector<4x32xf32>
    %cst_7 = arith.constant dense<0.000000e+00> : vector<128x32xf32>
    %5 = tpu.matmul %3, %4, %cst_7 {dimension_numbers = #tpu.dot_dimension_numbers<[1], [0], [0], [1], [0, 0, 1, 1], [], []>} : vector<128x4xf32>, vector<4x32xf32>, vector<128x32xf32> -> vector<128x32xf32>
    %6 = arith.addf %2, %5 : vector<128x32xf32>
    %c0_8 = arith.constant 0 : index
    %c0_9 = arith.constant 0 : index
    %7 = vector.load %arg5[%c0_8, %c0_9] : memref<1x32xf32, #tpu.memory_space<vmem>>, vector<1x32xf32>
    %8 = vector.broadcast %7 : vector<1x32xf32> to vector<128x32xf32>
    %9 = arith.addf %6, %8 : vector<128x32xf32>
    %cst_10 = arith.constant 0.000000e+00 : f32
    %10 = vector.broadcast %cst_10 : f32 to vector<128x32xf32>
    %11 = arith.maximumf %9, %10 : vector<128x32xf32>
    %c0_11 = arith.constant 0 : index
    %c0_12 = arith.constant 0 : index
    %12 = vector.load %arg6[%c0_11, %c0_12] : memref<32x32xf32, #tpu.memory_space<vmem>>, vector<32x32xf32>
    %cst_13 = arith.constant dense<0.000000e+00> : vector<128x32xf32>
    %13 = tpu.matmul %11, %12, %cst_13 {dimension_numbers = #tpu.dot_dimension_numbers<[1], [0], [0], [1], [0, 0, 1, 1], [], []>} : vector<128x32xf32>, vector<32x32xf32>, vector<128x32xf32> -> vector<128x32xf32>
    %c0_14 = arith.constant 0 : index
    %c0_15 = arith.constant 0 : index
    %14 = vector.load %arg7[%c0_14, %c0_15] : memref<1x32xf32, #tpu.memory_space<vmem>>, vector<1x32xf32>
    %15 = vector.broadcast %14 : vector<1x32xf32> to vector<128x32xf32>
    %16 = arith.addf %13, %15 : vector<128x32xf32>
    %cst_16 = arith.constant 0.000000e+00 : f32
    %17 = vector.broadcast %cst_16 : f32 to vector<128x32xf32>
    %18 = arith.maximumf %16, %17 : vector<128x32xf32>
    %c0_17 = arith.constant 0 : index
    %c0_18 = arith.constant 0 : index
    %19 = vector.load %arg8[%c0_17, %c0_18] : memref<1x32xf32, #tpu.memory_space<vmem>>, vector<1x32xf32>
    %cst_19 = arith.constant dense<0.000000e+00> : vector<1x128xf32>
    %20 = tpu.matmul %19, %18, %cst_19 {dimension_numbers = #tpu.dot_dimension_numbers<[1], [1], [0], [0], [0, 0, 1, 0], [], []>} : vector<1x32xf32>, vector<128x32xf32>, vector<1x128xf32> -> vector<1x128xf32>
    %c0_20 = arith.constant 0 : index
    %c0_21 = arith.constant 0 : index
    %21 = vector.load %arg9[%c0_20, %c0_21] : memref<1x1xf32, #tpu.memory_space<vmem>>, vector<1x1xf32>
    %22 = vector.broadcast %21 : vector<1x1xf32> to vector<1x128xf32>
    %23 = arith.addf %20, %22 : vector<1x128xf32>
    %c0_22 = arith.constant 0 : index
    %c0_23 = arith.constant 0 : index
    %24 = vector.load %arg10[%c0_22, %c0_23] : memref<1x128xf32, #tpu.memory_space<vmem>>, vector<1x128xf32>
    tpu.vector_store %arg10[%c0_22, %c0_23], %23 {strides = array<i32>} : memref<1x128xf32, #tpu.memory_space<vmem>>, vector<1x128xf32>,
    return
  }
  func.func @transform_0(%arg0: i32) -> (i32, i32) {
    %c0_i32 = arith.constant 0 : i32
    %c0_i32_0 = arith.constant 0 : i32
    return %arg0, %c0_i32 : i32, i32
  }
  func.func @transform_1(%arg0: i32) -> (i32, i32) {
    %c0_i32 = arith.constant 0 : i32
    %c0_i32_0 = arith.constant 0 : i32
    return %arg0, %c0_i32 : i32, i32
  }
  func.func @transform_2(%arg0: i32) -> (i32, i32) {
    %c0_i32 = arith.constant 0 : i32
    %c0_i32_0 = arith.constant 0 : i32
    %c0_i32_1 = arith.constant 0 : i32
    return %c0_i32, %c0_i32_0 : i32, i32
  }
  func.func @transform_3(%arg0: i32) -> (i32, i32) {
    %c0_i32 = arith.constant 0 : i32
    %c0_i32_0 = arith.constant 0 : i32
    %c0_i32_1 = arith.constant 0 : i32
    return %c0_i32, %c0_i32_0 : i32, i32
  }
  func.func @transform_4(%arg0: i32) -> (i32, i32) {
    %c0_i32 = arith.constant 0 : i32
    %c0_i32_0 = arith.constant 0 : i32
    %c0_i32_1 = arith.constant 0 : i32
    return %c0_i32, %c0_i32_0 : i32, i32
  }
  func.func @transform_5(%arg0: i32) -> (i32, i32) {
    %c0_i32 = arith.constant 0 : i32
    %c0_i32_0 = arith.constant 0 : i32
    %c0_i32_1 = arith.constant 0 : i32
    return %c0_i32, %c0_i32_0 : i32, i32
  }
  func.func @transform_6(%arg0: i32) -> (i32, i32) {
    %c0_i32 = arith.constant 0 : i32
    %c0_i32_0 = arith.constant 0 : i32
    %c0_i32_1 = arith.constant 0 : i32
    return %c0_i32, %c0_i32_0 : i32, i32
  }
  func.func @transform_7(%arg0: i32) -> (i32, i32) {
    %c0_i32 = arith.constant 0 : i32
    %c0_i32_0 = arith.constant 0 : i32
    %c0_i32_1 = arith.constant 0 : i32
    return %c0_i32, %c0_i32_0 : i32, i32
  }
  func.func @transform_8(%arg0: i32) -> (i32, i32) {
    %c0_i32 = arith.constant 0 : i32
    %c0_i32_0 = arith.constant 0 : i32
    %c0_i32_1 = arith.constant 0 : i32
    return %c0_i32, %c0_i32_0 : i32, i32
  }
  func.func @transform_9(%arg0: i32) -> (i32, i32) {
    %c0_i32 = arith.constant 0 : i32
    %c0_i32_0 = arith.constant 0 : i32
    return %c0_i32, %arg0 : i32, i32
  }
}

</mosaic_0001>

<bundles_post_ra>
// kernel: tpu_custom_call.1
= control target key start
LH: loop header
LB: loop body
LE: loop exit
PB: predicated region body
PF: predicated region fallthrough
CT: control target
= control target key end

     0   :  { %s1964_s0 = inlined_call_operand.vmem [shape: f32[256,12], index: 0, kind: input, shape index: {}]   ;;  %s1965_s1 = inlined_call_operand.vmem [shape: f32[256,4], index: 1, kind: input, shape index: {}]   ;;  %s1966_s2 = inlined_call_operand.vmem [shape: f32[12,32], index: 2, kind: input, shape index: {}]   ;;  %s1967_s3 = inlined_call_operand.vmem [shape: f32[4,32], index: 3, kind: input, shape index: {}]   ;;  %s1968_s4 = inlined_call_operand.vmem [shape: f32[1,32], index: 4, kind: input, shape index: {}]   ;;  %s1969_s5 = inlined_call_operand.vmem [shape: f32[32,32], index: 5, kind: input, shape index: {}]   ;;  %s1970_s6 = inlined_call_operand.vmem [shape: f32[1,32], index: 6, kind: input, shape index: {}]   ;;  %s1971_s7 = inlined_call_operand.vmem [shape: f32[1,32], index: 7, kind: input, shape index: {}]   ;;  %s1972_s8 = inlined_call_operand.<no memory space> [shape: f32[1,1], index: 8, kind: input, shape index: {}]   ;;  %s1973_s9 = inlined_call_operand.hbm [shape: f32[1,256], index: 9, kind: output, shape index: {}]  }
   0x1   :  { %v14_v0 = vstv %s1972_s8 }
   0x2   :  { %15 = vst [vmem:[#allocation2] sm:$0x1] %v14_v0 }
   0x3   :  { %16 = vsyncpa [#allocation4], 0 }
   0x4   :  { %18 = vsyncpa [#allocation4 + $0x1], 0  ;;  %s1694_s11 = smov 0   ;;  %s1696_s12 = smov 0  }
   0x5   :  { %s1698_s13 = smov 0   ;;  %s1700_s14 = smov 0  }
   0x6 LB: > { %s1258_s8 = sadd.s32 4294967295, %s1635_s14   ;;  %s1259_s15 = sadd.s32 4294967294, %s1635_s14   ;;  %s1635_s14 = sphi %s1700_s14, %s1979_s14   ;;  %s1631_s13 = sphi %s1698_s13, %s1978_s13   ;;  %s1627_s12 = sphi %s1696_s12, %s1977_s12   ;;  %s1623_s11 = sphi %s1694_s11, %s1976_s11  }
   0x7   : > { %s1717_s16 = sadd.s32 1, %s1635_s14   ;;  %s230_s17 = sadd.s32 1, %s1631_s13 }
   0x8   : > { %s227_s18 = ssub.s32 %s1635_s14, %s1717_s16  ;;  %p240_p0 = scmp.ne.s32.totalorder %s1631_s13, %s1627_s12 }
   0x9   : > { %p228_p1 = scmp.eq.s32.totalorder %s227_s18, 0  ;;  %p241_p2 = scmp.eq.s32.totalorder %s1258_s8, 1 }
   0xa   : > { %p246_p3 = scmp.ne.s32.totalorder %s1627_s12, %s1623_s11  ;;  %p247_p4 = scmp.eq.s32.totalorder %s1259_s15, 1 }
   0xb   : > { %s1727_s19 = scalar_select %p228_p1, %s1631_s13, %s230_s17  }
   0xc   : > { %p1729_p5 = por %p241_p2, %p240_p0  ;;  %p1733_p6 = por %p247_p4, %p246_p3 }
   0xd   : > { %p1262_p7 = scmp.ge.s32.totalorder %s1635_s14, 1  ;;  %p304_p8 = scmp.lt.s32.totalorder %s1635_s14, 3 }
   0xf   : > { %p305_p9 = pnand %p1262_p7, %p304_p8 }
  0x10   : > { %s1748_s28 = sshll.u32 (!%p305_p9), %s1258_s8, 4  ;;  %s1640_s17 = smov (!%p305_p9), [#allocation3]  }
  0x11   : > { %308 = sbr.rel (%p305_p9) target bundleno = 728 (0x2d8), region = 56  ;;  %p345_p10 = scmp.lt.s32.totalorder (!%p305_p9), %s1748_s28, 31 }
  0x12   : > { %s1929_s30 = scalar_lea.hbm (!%p305_p9), %s1973_s9, %s1748_s28  ;;  %s1579_s18 = sshll.u32 (!%p305_p9), %s1640_s17, 4  ;;  %s1580_s18 = int_to_ptr.vmem [resolvable:$false] %s1579_s18 }
  0x16   : > { %v373_v1 = vld [vmem:[%s1966_s2 + $0x8] sm:$0xf]  ;;  %vm440_vm0 = vcmask 1043456   ;;  %v390_v2 = vld [vmem:[%s1967_s3] sm:$0xf]  ;;  %v828_v4 = vld [vmem:[%s1969_s5 + $0x18] sm:$0xff] }
  0x17   : > { %v372_v3 = vld [vmem:[%s1966_s2] sm:$0xff]  ;;  %1437 = vmatprep.subr.msk.mxu1 %vm440_vm0, %v373_v1  ;;  %1411 = vmatprep.subr.msk.mxu0 %vm440_vm0, %v390_v2  ;;  %s346_s10 = scalar_select %p345_p10, %s1748_s28, 31  ;;  %vm391_vm1 = vcmask 31744   ;;  %vm589_vm2 = vcmask 97280   ;;  %v827_v11 = vld [vmem:[%s1969_s5 + $0x10] sm:$0xff]  ;;  %v826_v16 = vld [vmem:[%s1969_s5 + $0x8] sm:$0xff] }
  0x18   : > { %1438 = vmatpush3.msk.msra.mxu1 %vm440_vm0, %v373_v1  ;;  %1412 = vmatpush3.msk.msra.mxu0 %vm440_vm0, %v390_v2  ;;  %v825_v39 = vld [vmem:[%s1969_s5] sm:$0xff]  ;;  %vm836_vm3 = vcmask 261120   ;;  %vm1638_vm4 = vmmov 0  }
  0x19   : > { %1439 = vmatprep.subr.mxu1 %v372_v3  ;;  %1465 = vmatprep.subr.mxu0 %v828_v4  ;;  %s1264_s15 = sshll.u32 %s346_s10, 3  ;;  %v1841_v43 = vld [vmem:[%s1968_s4] ss:$0 sm:$0xff] }
  0x1a   : > { %1440 = vmatpush3.msra.mxu1 %v372_v3  ;;  %s1758_s8 = scalar_lea.vmem %s1965_s1, %s1264_s15  ;;  %s1763_s24 = scalar_lea.vmem %s1964_s0, %s1264_s15 }
  0x1b   : > { %v374_v5 = vld [vmem:[%s1758_s8] sm:$0xff]  ;;  %v375_v7 = vld [vmem:[%s1758_s8 + $0x8] sm:$0xff]  ;;  %v376_v9 = vld [vmem:[%s1758_s8 + $0x10] sm:$0xff] }
  0x1c   : > { %v356_v6 = vld [vmem:[%s1763_s24] sm:$0xff]  ;;  %1413 = vmatprep.mubr.msk.f32.mxu0 %vm391_vm1, %v374_v5  ;;  %v357_v8 = vld [vmem:[%s1763_s24 + $0x8] sm:$0xff]  ;;  %v358_v10 = vld [vmem:[%s1763_s24 + $0x10] sm:$0xff] }
  0x1d   : > { %1441 = vmatprep.mubr.msk.f32.mxu1 %vm589_vm2, %v356_v6  ;;  %1414 = vmatmul.mubr.msk.f32.vlgmr.msra.gmra.mxu0 %vm391_vm1, %v375_v7  ;;  %v377_v12 = vld [vmem:[%s1758_s8 + $0x18] sm:$0xff]  ;;  %v378_v14 = vld [vmem:[%s1758_s8 + $0x20] sm:$0xff]  ;;  %v379_v17 = vld [vmem:[%s1758_s8 + $0x28] sm:$0xff] }
  0x1e   : > { %1442 = vmatmul.mubr.msk.f32.vlgmr.msra.gmra.mxu1 %vm589_vm2, %v357_v8  ;;  %1416 = vmatprep.mubr.msk.f32.mxu0 %vm391_vm1, %v376_v9  ;;  %v359_v13 = vld [vmem:[%s1763_s24 + $0x18] sm:$0xff]  ;;  %v360_v15 = vld [vmem:[%s1763_s24 + $0x20] sm:$0xff]  ;;  %v361_v18 = vld [vmem:[%s1763_s24 + $0x28] sm:$0xff] }
  0x1f   : > { %1444 = vmatprep.mubr.msk.f32.mxu1 %vm589_vm2, %v358_v10  ;;  %1466 = vmatpush3.msra.mxu0 %v828_v4  ;;  %v380_v19 = vld [vmem:[%s1758_s8 + $0x30] sm:$0xff]  ;;  %v381_v21 = vld [vmem:[%s1758_s8 + $0x38] sm:$0xff]  ;;  %v382_v23 = vld [vmem:[%s1758_s8 + $0x40] sm:$0xff] }
  0x20   : > { %1467 = vmatprep.subr.mxu0 %v827_v11  ;;  %v362_v20 = vld [vmem:[%s1763_s24 + $0x30] sm:$0xff]  ;;  %v363_v22 = vld [vmem:[%s1763_s24 + $0x38] sm:$0xff]  ;;  %v364_v24 = vld [vmem:[%s1763_s24 + $0x40] sm:$0xff] }
  0x21   : > { %1417 = vmatmul.mubr.msk.f32.gmra.mxu0 %vm391_vm1, %v377_v12  ;;  %v383_v25 = vld [vmem:[%s1758_s8 + $0x48] sm:$0xff]  ;;  %v384_v27 = vld [vmem:[%s1758_s8 + $0x50] sm:$0xff]  ;;  %v385_v29 = vld [vmem:[%s1758_s8 + $0x58] sm:$0xff] }
  0x22   : > { %1445 = vmatmul.mubr.msk.f32.gmra.mxu1 %vm589_vm2, %v359_v13  ;;  %1419 = vmatprep.mubr.msk.f32.mxu0 %vm391_vm1, %v378_v14  ;;  %v365_v26 = vld [vmem:[%s1763_s24 + $0x48] sm:$0xff]  ;;  %v366_v28 = vld [vmem:[%s1763_s24 + $0x50] sm:$0xff]  ;;  %v367_v30 = vld [vmem:[%s1763_s24 + $0x58] sm:$0xff] }
  0x23   : > { %1447 = vmatprep.mubr.msk.f32.mxu1 %vm589_vm2, %v360_v15  ;;  %1468 = vmatpush3.msra.mxu0 %v827_v11  ;;  %v386_v31 = vld [vmem:[%s1758_s8 + $0x60] sm:$0xff]  ;;  %v387_v33 = vld [vmem:[%s1758_s8 + $0x68] sm:$0xff]  ;;  %v388_v35 = vld [vmem:[%s1758_s8 + $0x70] sm:$0xff] }
  0x24   : > { %1469 = vmatprep.subr.mxu0 %v826_v16  ;;  %v368_v32 = vld [vmem:[%s1763_s24 + $0x60] sm:$0xff]  ;;  %v369_v34 = vld [vmem:[%s1763_s24 + $0x68] sm:$0xff]  ;;  %v370_v36 = vld [vmem:[%s1763_s24 + $0x70] sm:$0xff] }
  0x25   : > { %1420 = vmatmul.mubr.msk.f32.gmra.mxu0 %vm391_vm1, %v379_v17  ;;  %v389_v37 = vld [vmem:[%s1758_s8 + $0x78] sm:$0xff]  ;;  %s1581_s8 = scalar_lea.vmem %s1580_s18, 32 }
  0x26   : > { %1448 = vmatmul.mubr.msk.f32.gmra.mxu1 %vm589_vm2, %v361_v18  ;;  %1422 = vmatprep.mubr.msk.f32.mxu0 %vm391_vm1, %v380_v19  ;;  %v371_v38 = vld [vmem:[%s1763_s24 + $0x78] sm:$0xff]  ;;  %s342_s24 = sand.u32 1, %s1627_s12  }
  0x27   : > { %1450 = vmatprep.mubr.msk.f32.mxu1 %vm589_vm2, %v362_v20  ;;  %1470 = vmatpush3.msra.mxu0 %v826_v16  ;;  %s343_s25 = scalar_lea.vmem [#allocation3], %s342_s24  ;;  %s1180_s10 = scalar_lea.sflag [#allocation4], %s342_s24 }
  0x28   : > { %1471 = vmatprep.subr.mxu0 %v825_v39  ;;  %s1192_s26 = sshll.u32 %s343_s25, 4  ;;  %s1193_s26 = int_to_ptr.vmem [resolvable:$true] %s1192_s26 }
  0x29   : > { %1423 = vmatmul.mubr.msk.f32.gmra.mxu0 %vm391_vm1, %v381_v21  ;;  %s1575_s15 = scalar_lea.vmem %s1193_s26, 16  ;;  %p1582_p0 = scmp.lt.s32.totalorder %s1193_s26, %s1580_s18 }
  0x2a   : > { %1451 = vmatmul.mubr.msk.f32.gmra.mxu1 %vm589_vm2, %v363_v22  ;;  %1425 = vmatprep.mubr.msk.f32.mxu0 %vm391_vm1, %v382_v23  ;;  %p1576_p11 = scmp.ne.s32.totalorder %s1193_s26, %s1575_s15  ;;  %p1583_p1 = scmp.lt.s32.totalorder %s1581_s8, %s1575_s15 }
  0x2b   : > { %1453 = vmatprep.mubr.msk.f32.mxu1 %vm589_vm2, %v364_v24  ;;  %1472 = vmatpush3.msra.mxu0 %v825_v39 }
  0x2c   : > { %p1577_p12 = pnand %p1576_p11, %p1729_p5  ;;  %p1584_p2 = por %p1583_p1, %p1582_p0 }
  0x2d   : > { %1426 = vmatmul.mubr.msk.f32.gmra.mxu0 %vm391_vm1, %v383_v25 }
  0x2e   : > { %1454 = vmatmul.mubr.msk.f32.gmra.mxu1 %vm589_vm2, %v365_v26  ;;  %1428 = vmatprep.mubr.msk.f32.mxu0 %vm391_vm1, %v384_v27  ;;  %p1578_p13 = pneg %p1577_p12 }
  0x2f   : > { %1456 = vmatprep.mubr.msk.f32.mxu1 %vm589_vm2, %v366_v28 }
  0x30   : > { %p1585_p3 = pnand %p1584_p2, %p1578_p13 }
  0x31   : > { %1429 = vmatmul.mubr.msk.f32.gmra.mxu0 %vm391_vm1, %v385_v29 }
  0x32   : > { %1457 = vmatmul.mubr.msk.f32.gmra.mxu1 %vm589_vm2, %v367_v30  ;;  %1431 = vmatprep.mubr.msk.f32.mxu0 %vm391_vm1, %v386_v31 }
  0x33   : > { %1459 = vmatprep.mubr.msk.f32.mxu1 %vm589_vm2, %v368_v32 }
  0x35   : > { %1432 = vmatmul.mubr.msk.f32.gmra.mxu0 %vm391_vm1, %v387_v33 }
  0x36   : > { %1460 = vmatmul.mubr.msk.f32.gmra.mxu1 %vm589_vm2, %v369_v34  ;;  %1434 = vmatprep.mubr.msk.f32.mxu0 %vm391_vm1, %v388_v35 }
  0x37   : > { %1462 = vmatprep.mubr.msk.f32.mxu1 %vm589_vm2, %v370_v36 }
  0x39   : > { %1435 = vmatmul.mubr.msk.f32.gmra.mxu0 %vm391_vm1, %v389_v37 }
  0x3a   : > { %1463 = vmatmul.mubr.msk.f32.gmra.mxu1 %vm589_vm2, %v371_v38 }
  0xdd   : > { %v1415_v40 = vpop.f32.mrf.mxu0 }
  0xde   : > { %v1443_v41 = vpop.f32.mrf.mxu1 }
  0xdf   : > { %v713_v42 = vadd.f32 %v1443_v41, %v1415_v40  ;;  %v510_v44 = vpop.f32.mrf.mxu0 }
  0xe0   : > { %v707_v45 = vpop.f32.mrf.mxu1 }
  0xe1   : > { %v708_v46 = vadd.f32 %v707_v45, %v510_v44  ;;  %v794_v47 = vadd.f32 %v1841_v43, %v713_v42  ;;  %v1418_v48 = vpop.f32.mrf.mxu0 }
  0xe2   : > { %v1446_v49 = vpop.f32.mrf.mxu1 }
  0xe3   : > { %v793_v50 = vadd.f32 %v1841_v43, %v708_v46  ;;  %v723_v51 = vadd.f32 %v1446_v49, %v1418_v48  ;;  %v520_v52 = vpop.f32.mrf.mxu0  ;;  %v810_v56 = vmax.f32 %v794_v47, 0.0 }
  0xe4   : > { %v717_v53 = vpop.f32.mrf.mxu1 }
  0xe5   : > { %v809_v54 = vmax.f32 %v793_v50, 0.0  ;;  %v718_v55 = vadd.f32 %v717_v53, %v520_v52  ;;  %v796_v57 = vadd.f32 %v1841_v43, %v723_v51  ;;  %v1421_v58 = vpop.f32.mrf.mxu0 }
  0xe6   : > { %v1449_v59 = vpop.f32.mrf.mxu1 }
  0xe7   : > { %v795_v60 = vadd.f32 %v1841_v43, %v718_v55  ;;  %v733_v61 = vadd.f32 %v1449_v59, %v1421_v58  ;;  %1473 = vmatprep.mubr.msk.f32.mxu0 %vm836_vm3, %v809_v54  ;;  %v530_v62 = vpop.f32.mrf.mxu0  ;;  %v812_v2 = vmax.f32 %v796_v57, 0.0  ;;  %v1637_v58 = vmov 0.0   ;;  %v1047_v59 = vld [vmem:[#allocation2] sm:$0x1] }
  0xe8   : > { %v727_v63 = vpop.f32.mrf.mxu1  ;;  %1474 = vmatmul.mubr.msk.f32.vlgmr.msra.gmra.mxu0 %vm836_vm3, %v810_v56  ;;  %1497 = vmatprep.subr.mxu1 %v1637_v58 }
  0xe9   : > { %v811_v0 = vmax.f32 %v795_v60, 0.0  ;;  %v728_v1 = vadd.f32 %v727_v63, %v530_v62  ;;  %v798_v3 = vadd.f32 %v1841_v43, %v733_v61  ;;  %v1424_v4 = vpop.f32.mrf.mxu0  ;;  %1529 = vmatprep.mubr.msk.f32.mxu1 %vm1638_vm4, %v1637_v58  ;;  %v1639_v60 = vmov 0  }
  0xea   : > { %v1452_v5 = vpop.f32.mrf.mxu1  ;;  %1574 = vset.pattern.permute.xlu0 %v1639_v60 }
  0xeb   : > { %v797_v6 = vadd.f32 %v1841_v43, %v728_v1  ;;  %v743_v7 = vadd.f32 %v1452_v5, %v1424_v4  ;;  %1476 = vmatprep.mubr.msk.f32.mxu0 %vm836_vm3, %v811_v0  ;;  %v540_v8 = vpop.f32.mrf.mxu0  ;;  %v814_v12 = vmax.f32 %v798_v3, 0.0  ;;  %1050 = vperm.xlu0 %1574, %v1047_v59  }
  0xec   : > { %v737_v9 = vpop.f32.mrf.mxu1  ;;  %1477 = vmatmul.mubr.msk.f32.gmra.mxu0 %vm836_vm3, %v812_v2 }
  0xed   : > { %v813_v10 = vmax.f32 %v797_v6, 0.0  ;;  %v738_v11 = vadd.f32 %v737_v9, %v540_v8  ;;  %v800_v13 = vadd.f32 %v1841_v43, %v743_v7  ;;  %v1427_v14 = vpop.f32.mrf.mxu0 }
  0xee   : > { %v1455_v15 = vpop.f32.mrf.mxu1 }
  0xef   : > { %v799_v16 = vadd.f32 %v1841_v43, %v738_v11  ;;  %v753_v17 = vadd.f32 %v1455_v15, %v1427_v14  ;;  %1479 = vmatprep.mubr.msk.f32.mxu0 %vm836_vm3, %v813_v10  ;;  %v550_v18 = vpop.f32.mrf.mxu0  ;;  %v816_v22 = vmax.f32 %v800_v13, 0.0  ;;  %v1302_v10 = vld [vmem:[%s1970_s6] ss:$0 sm:$0xff] }
  0xf0   : > { %v747_v19 = vpop.f32.mrf.mxu1  ;;  %1480 = vmatmul.mubr.msk.f32.gmra.mxu0 %vm836_vm3, %v814_v12 }
  0xf1   : > { %v815_v20 = vmax.f32 %v799_v16, 0.0  ;;  %v748_v21 = vadd.f32 %v747_v19, %v550_v18  ;;  %v802_v23 = vadd.f32 %v1841_v43, %v753_v17  ;;  %v1430_v24 = vpop.f32.mrf.mxu0 }
  0xf2   : > { %v1458_v25 = vpop.f32.mrf.mxu1 }
  0xf3   : > { %v801_v26 = vadd.f32 %v1841_v43, %v748_v21  ;;  %v763_v27 = vadd.f32 %v1458_v25, %v1430_v24  ;;  %1482 = vmatprep.mubr.msk.f32.mxu0 %vm836_vm3, %v815_v20  ;;  %v560_v28 = vpop.f32.mrf.mxu0  ;;  %v818_v32 = vmax.f32 %v802_v23, 0.0 }
  0xf4   : > { %v757_v29 = vpop.f32.mrf.mxu1  ;;  %1483 = vmatmul.mubr.msk.f32.gmra.mxu0 %vm836_vm3, %v816_v22 }
  0xf5   : > { %v817_v30 = vmax.f32 %v801_v26, 0.0  ;;  %v758_v31 = vadd.f32 %v757_v29, %v560_v28  ;;  %v804_v33 = vadd.f32 %v1841_v43, %v763_v27  ;;  %v1433_v34 = vpop.f32.mrf.mxu0 }
  0xf6   : > { %v1461_v35 = vpop.f32.mrf.mxu1 }
  0xf7   : > { %v803_v36 = vadd.f32 %v1841_v43, %v758_v31  ;;  %v773_v37 = vadd.f32 %v1461_v35, %v1433_v34  ;;  %1485 = vmatprep.mubr.msk.f32.mxu0 %vm836_vm3, %v817_v30  ;;  %v570_v38 = vpop.f32.mrf.mxu0  ;;  %v820_v42 = vmax.f32 %v804_v33, 0.0 }
  0xf8   : > { %v767_v39 = vpop.f32.mrf.mxu1  ;;  %1486 = vmatmul.mubr.msk.f32.gmra.mxu0 %vm836_vm3, %v818_v32 }
  0xf9   : > { %v819_v40 = vmax.f32 %v803_v36, 0.0  ;;  %v768_v41 = vadd.f32 %v767_v39, %v570_v38  ;;  %v806_v44 = vadd.f32 %v1841_v43, %v773_v37  ;;  %v1436_v45 = vpop.f32.mrf.mxu0 }
  0xfa   : > { %v1464_v46 = vpop.f32.mrf.mxu1 }
  0xfb   : > { %v805_v47 = vadd.f32 %v1841_v43, %v768_v41  ;;  %v783_v48 = vadd.f32 %v1464_v46, %v1436_v45  ;;  %1488 = vmatprep.mubr.msk.f32.mxu0 %vm836_vm3, %v819_v40  ;;  %v580_v49 = vpop.f32.mrf.mxu0  ;;  %v822_v53 = vmax.f32 %v806_v44, 0.0  ;;  %v1046_v46 = vld [vmem:[%s1971_s7] sm:$0x1] }
  0xfc   : > { %v777_v50 = vpop.f32.mrf.mxu1  ;;  %1489 = vmatmul.mubr.msk.f32.gmra.mxu0 %vm836_vm3, %v820_v42 }
  0xfd   : > { %v821_v51 = vmax.f32 %v805_v47, 0.0  ;;  %v778_v52 = vadd.f32 %v777_v50, %v580_v49  ;;  %v808_v54 = vadd.f32 %v1841_v43, %v783_v48  ;;  %v1053_v47 = vlaneseq }
  0xff   : > { %v807_v55 = vadd.f32 %v1841_v43, %v778_v52  ;;  %1491 = vmatprep.mubr.msk.f32.mxu0 %vm836_vm3, %v821_v51  ;;  %v824_v57 = vmax.f32 %v808_v54, 0.0  ;;  %v1054_v48 = vshrl.u32 %v1053_v47, 7 }
 0x100   : > { %1492 = vmatmul.mubr.msk.f32.gmra.mxu0 %vm836_vm3, %v822_v53 }
 0x101   : > { %v823_v56 = vmax.f32 %v807_v55, 0.0  ;;  %v1055_v49 = vsub.s32 0, %v1054_v48 }
 0x103   : > { %1494 = vmatprep.mubr.msk.f32.mxu0 %vm836_vm3, %v823_v56 }
 0x104   : > { %1495 = vmatmul.mubr.msk.f32.gmra.mxu0 %vm836_vm3, %v824_v57 }
 0x166   : > { %v1051_v50 = vpop.permute.xlu0 %1050 }
 0x167   : > { %v1056_v51 = vrot.slane %v1051_v50, %v1055_v49 }
 0x1a8   : > { %v1877_v43 = vpop.f32.mrf.mxu0 }
 0x1a9   : > { %v957_v40 = vadd.f32 %v1877_v43, %v1302_v10 }
 0x1aa   : > { %v1879_v61 = vpop.f32.mrf.mxu0 }
 0x1ab   : > { %v1031_v42 = vmax.f32 %v957_v40, 0.0  ;;  %v952_v44 = vadd.f32 %v1302_v10, %v1879_v61 }
 0x1ac   : > { %v1478_v62 = vpop.f32.mrf.mxu0 }
 0x1ad   : > { %v967_v36 = vadd.f32 %v1478_v62, %v1302_v10  ;;  %v1030_v45 = vmax.f32 %v952_v44, 0.0 }
 0x1ae   : > { %v1881_v63 = vpop.f32.mrf.mxu0 }
 0x1af   : > { %v1033_v38 = vmax.f32 %v967_v36, 0.0  ;;  %v962_v39 = vadd.f32 %v1302_v10, %v1881_v63 }
 0x1b0   : > { %v1481_v0 = vpop.f32.mrf.mxu0 }
 0x1b1   : > { %v977_v32 = vadd.f32 %v1481_v0, %v1302_v10  ;;  %v1032_v41 = vmax.f32 %v962_v39, 0.0 }
 0x1b2   : > { %v971_v1 = vpop.f32.mrf.mxu0 }
 0x1b3   : > { %v1035_v34 = vmax.f32 %v977_v32, 0.0  ;;  %v972_v35 = vadd.f32 %v1302_v10, %v971_v1 }
 0x1b4   : > { %v1484_v2 = vpop.f32.mrf.mxu0 }
 0x1b5   : > { %v987_v28 = vadd.f32 %v1484_v2, %v1302_v10  ;;  %v1034_v37 = vmax.f32 %v972_v35, 0.0 }
 0x1b6   : > { %v981_v3 = vpop.f32.mrf.mxu0 }
 0x1b7   : > { %v1037_v30 = vmax.f32 %v987_v28, 0.0  ;;  %v982_v31 = vadd.f32 %v1302_v10, %v981_v3 }
 0x1b8   : > { %v1487_v4 = vpop.f32.mrf.mxu0 }
 0x1b9   : > { %v997_v24 = vadd.f32 %v1487_v4, %v1302_v10  ;;  %v1036_v33 = vmax.f32 %v982_v31, 0.0 }
 0x1ba   : > { %v991_v5 = vpop.f32.mrf.mxu0 }
 0x1bb   : > { %v1039_v26 = vmax.f32 %v997_v24, 0.0  ;;  %v992_v27 = vadd.f32 %v1302_v10, %v991_v5 }
 0x1bc   : > { %v1490_v6 = vpop.f32.mrf.mxu0 }
 0x1bd   : > { %v1007_v20 = vadd.f32 %v1490_v6, %v1302_v10  ;;  %v1038_v29 = vmax.f32 %v992_v27, 0.0 }
 0x1be   : > { %v1001_v7 = vpop.f32.mrf.mxu0 }
 0x1bf   : > { %v1041_v22 = vmax.f32 %v1007_v20, 0.0  ;;  %v1002_v23 = vadd.f32 %v1302_v10, %v1001_v7 }
 0x1c0   : > { %v1493_v8 = vpop.f32.mrf.mxu0 }
 0x1c1   : > { %v1017_v16 = vadd.f32 %v1493_v8, %v1302_v10  ;;  %v1040_v25 = vmax.f32 %v1002_v23, 0.0 }
 0x1c2   : > { %v1011_v9 = vpop.f32.mrf.mxu0 }
 0x1c3   : > { %v1043_v18 = vmax.f32 %v1017_v16, 0.0  ;;  %v1012_v19 = vadd.f32 %v1302_v10, %v1011_v9 }
 0x1c4   : > { %v1496_v11 = vpop.f32.mrf.mxu0 }
 0x1c5   : > { %v1027_v12 = vadd.f32 %v1496_v11, %v1302_v10  ;;  %v1042_v21 = vmax.f32 %v1012_v19, 0.0 }
 0x1c6   : > { %v1021_v13 = vpop.f32.mrf.mxu0 }
 0x1c7   : > { %v1045_v14 = vmax.f32 %v1027_v12, 0.0  ;;  %v1022_v15 = vadd.f32 %v1302_v10, %v1021_v13 }
 0x1c9   : > { %1498 = vmatpush3.xpose.msk.msra.mxu1 %vm836_vm3, %v1045_v14  ;;  %v1044_v17 = vmax.f32 %v1022_v15, 0.0 }
 0x1ca   : > { %1499 = vmatprep.subr.mxu1 %v1637_v58 }
 0x1cd   : > { %1500 = vmatpush3.xpose.msk.msra.mxu1 %vm836_vm3, %v1044_v17 }
 0x1ce   : > { %1501 = vmatprep.subr.mxu1 %v1637_v58 }
 0x1d1   : > { %1502 = vmatpush3.xpose.msk.msra.mxu1 %vm836_vm3, %v1043_v18 }
 0x1d2   : > { %1503 = vmatprep.subr.mxu1 %v1637_v58 }
 0x1d5   : > { %1504 = vmatpush3.xpose.msk.msra.mxu1 %vm836_vm3, %v1042_v21 }
 0x1d6   : > { %1505 = vmatprep.subr.mxu1 %v1637_v58 }
 0x1d9   : > { %1506 = vmatpush3.xpose.msk.msra.mxu1 %vm836_vm3, %v1041_v22 }
 0x1da   : > { %1507 = vmatprep.subr.mxu1 %v1637_v58 }
 0x1dd   : > { %1508 = vmatpush3.xpose.msk.msra.mxu1 %vm836_vm3, %v1040_v25 }
 0x1de   : > { %1509 = vmatprep.subr.mxu1 %v1637_v58 }
 0x1e1   : > { %1510 = vmatpush3.xpose.msk.msra.mxu1 %vm836_vm3, %v1039_v26 }
 0x1e2   : > { %1511 = vmatprep.subr.mxu1 %v1637_v58 }
 0x1e5   : > { %1512 = vmatpush3.xpose.msk.msra.mxu1 %vm836_vm3, %v1038_v29 }
 0x1e6   : > { %1513 = vmatprep.subr.mxu1 %v1637_v58 }
 0x1e9   : > { %1514 = vmatpush3.xpose.msk.msra.mxu1 %vm836_vm3, %v1037_v30 }
 0x1ea   : > { %1515 = vmatprep.subr.mxu1 %v1637_v58 }
 0x1ed   : > { %1516 = vmatpush3.xpose.msk.msra.mxu1 %vm836_vm3, %v1036_v33 }
 0x1ee   : > { %1517 = vmatprep.subr.mxu1 %v1637_v58 }
 0x1f1   : > { %1518 = vmatpush3.xpose.msk.msra.mxu1 %vm836_vm3, %v1035_v34 }
 0x1f2   : > { %1519 = vmatprep.subr.mxu1 %v1637_v58 }
 0x1f5   : > { %1520 = vmatpush3.xpose.msk.msra.mxu1 %vm836_vm3, %v1034_v37 }
 0x1f6   : > { %1521 = vmatprep.subr.mxu1 %v1637_v58 }
 0x1f9   : > { %1522 = vmatpush3.xpose.msk.msra.mxu1 %vm836_vm3, %v1033_v38 }
 0x1fa   : > { %1523 = vmatprep.subr.mxu1 %v1637_v58 }
 0x1fd   : > { %1524 = vmatpush3.xpose.msk.msra.mxu1 %vm836_vm3, %v1032_v41 }
 0x1fe   : > { %1525 = vmatprep.subr.mxu1 %v1637_v58 }
 0x201   : > { %1526 = vmatpush3.xpose.msk.msra.mxu1 %vm836_vm3, %v1031_v42 }
 0x202   : > { %1527 = vmatprep.subr.mxu1 %v1637_v58 }
 0x205   : > { %1528 = vmatpush3.xpose.msk.msra.mxu1 %vm836_vm3, %v1030_v45 }
 0x208   : > { %1530 = vmatmul.mubr.msk.f32.vlgmr.msra.gmra.mxu1 %vm836_vm3, %v1046_v46 }
 0x2c8   : > { %v1174_v52 = vpop.f32.mrf.mxu1 }
 0x2c9   : > { %v1175_v53 = vadd.f32 %v1174_v52, %v1056_v51 }
 0x2ca   : > { %v1531_v54 = vpop.f32.mrf.mxu1 }
 0x2cb   : > { %1178 = vst [vmem:[%s343_s25] sm:$0x1] %v1175_v53 }
 0x2cc   : > { %1588 = shalt.err (!%p1585_p3)
}
 0x2cd   : > { %s1589_s28 = scalar_lea.hbm %s1929_s30, 16  ;;  %s1593_s24 = scalar_lea.hbm %s1973_s9, 32 }
 0x2ce   : > { %p1590_p4 = scmp.ne.s32.totalorder %s1929_s30, %s1589_s28  ;;  %p1594_p9 = scmp.lt.s32.totalorder %s1929_s30, %s1973_s9 }
 0x2cf   : > { %p1595_p10 = scmp.lt.s32.totalorder %s1593_s24, %s1589_s28 }
 0x2d0   : > { %p1591_p7 = pnand %p1590_p4, %p1729_p5 }
 0x2d1   : > { %p1596_p11 = por %p1595_p10, %p1594_p9 }
 0x2d2   : > { %p1592_p8 = pneg %p1591_p7 }
 0x2d4   : > { %p1597_p12 = pnand %p1596_p11, %p1592_p8 }
 0x2d6   : > { %1600 = shalt.err (!%p1597_p12)
}
 0x2d7   : > { %1532 = dma.vmem_to_hbm [thread:$0]  (%p1729_p5), %s1193_s26, 16, %s1929_s30, %s1180_s10  }
 0x2d8 PF: > { %p1538_p13 = scmp.ge.s32.totalorder %s1635_s14, 2  ;;  %s1204_s29 = sand.u32 1, %s1623_s11  }
 0x2d9   : > { %s1205_s15 = scalar_lea.sflag [#allocation4], %s1204_s29 }
 0x2da   : > { %p1535_p0 = pnand %p1538_p13, %p1733_p6 }
 0x2dc   : > { %p1536_p1 = pneg %p1535_p0 }
 0x2de   : > { %1618 = dma.done.wait (%p1536_p1), %s1205_s15, 16  }
 0x2df   : > { %1620 = vsyncadd (%p1536_p1), %s1205_s15, 4294967280  ;;  %p21_p2 = scmp.ge.s32.totalorder %s1717_s16, 4   ;;  %s1976_s11 = smov %s1627_s12 }
 0x2e0   : > { %s1977_s12 = smov %s1631_s13  ;;  %s1978_s13 = smov %s1727_s19 }
 0x2e1   : > { %s1979_s14 = smov %s1717_s16  ;;  %23 = sbr.rel (!%p21_p2) target bundleno = 6 (0x6), region = 94 }
 0x2e6   :  { %1209 = vsyncpa [#allocation4], 1 }
 0x2e7   :  { %1211 = vsyncpa [#allocation4 + $0x1], 1 }

</bundles_post_ra>
